<compile_context>
chip_gen: v6e
topology: v6e:2x2x1
jax: 0.10.0
libtpu: 0.0.40
codegen_flags: <defaults>
</compile_context>

<pallas_src>
import functools

import jax
import jax.numpy as jnp
from jax.experimental import pallas as pl
from jax.experimental.pallas import tpu as pltpu


def _round_up(v, m):
    return ((v + m - 1) // m) * m


# ----------------------------- fused Pallas kernel --------------------------

def _fused_forward_kernel(a_ref, p_ref, x_ref,
                          w0_ref, b0_ref, ws_ref, bs_ref,
                          s_ref, wlin_ref, blin_ref,
                          y_ref, g_ref,
                          *, hidden_layer):
    """Single grid step: both inner blocks computed lane-concatenated."""
    a = a_ref[...]                                                     # [N, N]

    # reassociated first layer, computed once and shared by both blocks:
    # h = (A @ X) @ [W0_1 | W0_2] + [b0_1 | b0_2]      (no ReLU on to_hidden)
    ax = jnp.dot(a, x_ref[...], preferred_element_type=jnp.float32)   # [N, F]
    h = jnp.dot(ax, w0_ref[...],
                preferred_element_type=jnp.float32) + b0_ref[...]     # [N, 2H]

    # hidden layers, both blocks at once via block-diagonal weights:
    # h = relu(A @ (h @ blockdiag(W1_i, W2_i)) + [b1_i | b2_i]); dropout = identity (eval)
    # TODO(synk): switch to lax.fori_loop(..., unroll=True) if hidden_layer grows large.
    for i in range(hidden_layer):
        hw = jnp.dot(h, ws_ref[i], preferred_element_type=jnp.float32)      # [N, 2H]
        h = jnp.maximum(
            jnp.dot(a, hw, preferred_element_type=jnp.float32) + bs_ref[i],
            0.0)

    # single pool over the concatenated slab: gb = [P@h1 | P@h2]
    gb = jnp.dot(p_ref[...], h, preferred_element_type=jnp.float32)   # [ng, 2H]

    # g = P@h1 + P@h2, written lane-dense via the constant fold matrix S ([2H, Hp])
    g_ref[...] = jnp.dot(gb, s_ref[...], preferred_element_type=jnp.float32)

    # y = g @ W_lin + b_lin  ==  gb @ [W_lin; W_lin] + b_lin   (lane-padded to Cp)
    y_ref[...] = (jnp.dot(gb, wlin_ref[...], preferred_element_type=jnp.float32)
                  + blin_ref[...])


def graph_block_gnn_forward(params, a_norm, p_pool, x, *, hidden_layer):
    n, f = x.shape
    ng = p_pool.shape[0]
    hdim, nc = params["w_lin"].shape
    h2 = 2 * hdim
    hp = _round_up(hdim, 128)       # lane-dense padded widths for the outputs
    cp = _round_up(nc, 128)

    m1, m2 = params["m1"], params["m2"]

    # ---- lane-concatenate the two inner blocks' parameters -------------------
    w0c = jnp.concatenate([m1["w0"], m2["w0"]], axis=1)                     # [F, 2H]
    b0c = jnp.concatenate([m1["b0"], m2["b0"]])[None, :]                    # [1, 2H]

    ws1 = jnp.stack(m1["ws"])                                               # [L, H, H]
    ws2 = jnp.stack(m2["ws"])                                               # [L, H, H]
    zblk = jnp.zeros((hidden_layer, hdim, hdim), jnp.float32)
    wsd = jnp.concatenate([jnp.concatenate([ws1, zblk], axis=2),
                           jnp.concatenate([zblk, ws2], axis=2)], axis=1)   # [L, 2H, 2H]
    bsc = jnp.concatenate([jnp.stack(m1["bs"]),
                           jnp.stack(m2["bs"])], axis=1)[:, None, :]        # [L, 1, 2H]

    # fold matrix: gb @ S == gb[:, :H] + gb[:, H:], padded to Hp lanes
    s_fold = jnp.concatenate([jnp.eye(hdim, hp, dtype=jnp.float32),
                              jnp.eye(hdim, hp, dtype=jnp.float32)], axis=0)  # [2H, Hp]

    # outer linear, stacked so it applies to the concatenated pooled slab, padded to Cp lanes
    w_lin_pad = jnp.pad(params["w_lin"], ((0, 0), (0, cp - nc)))            # [H, Cp]
    w_lin2 = jnp.concatenate([w_lin_pad, w_lin_pad], axis=0)                # [2H, Cp]
    b_lin_pad = jnp.pad(params["b_lin"], (0, cp - nc)).reshape(1, cp)       # [1, Cp]

    kernel = functools.partial(_fused_forward_kernel, hidden_layer=hidden_layer)

    y_pad, g_pad = pl.pallas_call(
        kernel,
        out_shape=(jax.ShapeDtypeStruct((ng, cp), jnp.float32),
                   jax.ShapeDtypeStruct((ng, hp), jnp.float32)),
        grid=(1,),
        in_specs=[
            # TODO(synk): at large N, row-tile A over a "parallel" grid axis
            # (partial pools reduced outside) to respect v7x's 64 MiB VMEM and
            # use its second TensorCore; resident full-A is fine at this scale.
            pl.BlockSpec((n, n), lambda i: (0, 0)),                         # A_norm
            pl.BlockSpec((ng, n), lambda i: (0, 0)),                        # P
            pl.BlockSpec((n, f), lambda i: (0, 0)),                         # X
            pl.BlockSpec((f, h2), lambda i: (0, 0)),                        # [W0_1|W0_2]
            pl.BlockSpec((1, h2), lambda i: (0, 0)),                        # [b0_1|b0_2]
            pl.BlockSpec((hidden_layer, h2, h2), lambda i: (0, 0, 0)),      # blockdiag Ws
            pl.BlockSpec((hidden_layer, 1, h2), lambda i: (0, 0, 0)),       # [bs_1|bs_2]
            pl.BlockSpec((h2, hp), lambda i: (0, 0)),                       # fold matrix S
            pl.BlockSpec((h2, cp), lambda i: (0, 0)),                       # [W_lin; W_lin]
            pl.BlockSpec((1, cp), lambda i: (0, 0)),                        # b_lin
        ],
        out_specs=(
            pl.BlockSpec((ng, cp), lambda i: (0, 0)),                       # y (lane-padded)
            pl.BlockSpec((ng, hp), lambda i: (0, 0)),                       # g (lane-padded)
        ),
        compiler_params=pltpu.CompilerParams(
            dimension_semantics=("arbitrary",),
            vmem_limit_bytes=32 * 1024 * 1024,
        ),
    )(a_norm, p_pool, x, w0c, b0c, wsd, bsc, s_fold, w_lin2, b_lin_pad)

    return y_pad[:, :nc], g_pad[:, :hdim]


# ------------------------------ glue (plain JAX) ----------------------------

def build_norm_adj(edge_index, num_nodes):
    """Dense GCN-normalized adjacency with self loops (PyG GCNConv semantics)."""
    src, dst = edge_index[0], edge_index[1]
    loops = jnp.arange(num_nodes, dtype=src.dtype)
    src = jnp.concatenate([src, loops])
    dst = jnp.concatenate([dst, loops])
    a = jnp.zeros((num_nodes, num_nodes), jnp.float32).at[dst, src].add(1.0)
    deg = a.sum(axis=1)
    dinv = jnp.where(deg > 0, 1.0 / jnp.sqrt(deg), 0.0)
    return a * dinv[:, None] * dinv[None, :]


def build_pool_matrix(batch, num_graphs):
    onehot = (batch[None, :] == jnp.arange(num_graphs)[:, None]).astype(jnp.float32)
    counts = onehot.sum(axis=1, keepdims=True)
    return onehot / jnp.maximum(counts, 1.0)      # [num_graphs, num_nodes]


def init_params(key, num_features, hidden, num_classes, hidden_layer):
    def dense(k, fan_in, fan_out):
        return (jax.random.normal(k, (fan_in, fan_out), jnp.float32)
                / jnp.sqrt(jnp.float32(fan_in)))

    def block_params(k):
        ks = jax.random.split(k, 2 * (hidden_layer + 2))
        p = {
            "w0": dense(ks[0], num_features, hidden),
            "b0": jax.random.normal(ks[1], (hidden,), jnp.float32) * 0.01,
            "ws": [], "bs": [],
        }
        for i in range(hidden_layer):
            p["ws"].append(dense(ks[2 + 2 * i], hidden, hidden))
            p["bs"].append(jax.random.normal(ks[3 + 2 * i], (hidden,), jnp.float32) * 0.01)
        return p

    k1, k2, k3, k4 = jax.random.split(key, 4)
    return {
        "m1": block_params(k1),
        "m2": block_params(k2),
        "w_lin": dense(k3, hidden, num_classes),
        "b_lin": jax.random.normal(k4, (num_classes,), jnp.float32) * 0.01,
    }


# ------------------------------ reference (JAX) -----------------------------

def reference_forward(params, a_norm, p_pool, x):
    def block(bp):
        h = a_norm @ (x @ bp["w0"]) + bp["b0"]
        for w, b in zip(bp["ws"], bp["bs"]):
            h = jnp.maximum(a_norm @ (h @ w) + b, 0.0)
        return h

    g1 = p_pool @ block(params["m1"])
    g = p_pool @ block(params["m2"]) + g1
    y = g @ params["w_lin"] + params["b_lin"]
    return y, g


# ---------------------------------- main ------------------------------------

if __name__ == "__main__":
    num_nodes = 16
    num_features = 8
    hidden = 32
    num_classes = 4
    hidden_layer = 2
    num_graphs = 2

    key = jax.random.PRNGKey(0)
    kx, kp = jax.random.split(key)

    # node features
    x = jax.random.normal(kx, (num_nodes, num_features), jnp.float32)

    # two 8-node ring graphs (bidirectional edges), deterministic
    edges = []
    for g0 in (0, 8):
        for i in range(8):
            a, b = g0 + i, g0 + (i + 1) % 8
            edges.append((a, b))
            edges.append((b, a))
    edge_index = jnp.array(edges, dtype=jnp.int32).T          # [2, E]
    batch = jnp.array([0] * 8 + [1] * 8, dtype=jnp.int32)      # node -> graph id

    a_norm = build_norm_adj(edge_index, num_nodes)
    p_pool = build_pool_matrix(batch, num_graphs)
    params = init_params(kp, num_features, hidden, num_classes, hidden_layer)

    y, g = graph_block_gnn_forward(params, a_norm, p_pool, x,
                                   hidden_layer=hidden_layer)
    y = jax.block_until_ready(y)
    g = jax.block_until_ready(g)

    y_ref, g_ref = reference_forward(params, a_norm, p_pool, x)
    assert y.shape == (num_graphs, num_classes) and g.shape == (num_graphs, hidden)
    assert jnp.allclose(y, y_ref, atol=1e-4, rtol=1e-4)
    assert jnp.allclose(g, g_ref, atol=1e-4, rtol=1e-4)

    print("KERNEL_OK")
</pallas_src>

<mosaic_0001>
module attributes {stable_mosaic.version = 11 : i64} {
  func.func @_fused_forward_kernel(%arg0: i32, %arg1: memref<16x16xf32, #tpu.memory_space<vmem>>, %arg2: memref<2x16xf32, #tpu.memory_space<vmem>>, %arg3: memref<16x8xf32, #tpu.memory_space<vmem>>, %arg4: memref<8x64xf32, #tpu.memory_space<vmem>>, %arg5: memref<1x64xf32, #tpu.memory_space<vmem>>, %arg6: memref<2x64x64xf32, #tpu.memory_space<vmem>>, %arg7: memref<2x1x64xf32, #tpu.memory_space<vmem>>, %arg8: memref<64x128xf32, #tpu.memory_space<vmem>>, %arg9: memref<64x128xf32, #tpu.memory_space<vmem>>, %arg10: memref<1x128xf32, #tpu.memory_space<vmem>>, %arg11: memref<2x128xf32, #tpu.memory_space<vmem>>, %arg12: memref<2x128xf32, #tpu.memory_space<vmem>>) attributes {dimension_semantics = [#tpu.dimension_semantics<arbitrary>], iteration_bounds = array<i64: 1>, scalar_prefetch = 0 : i64, scratch_operands = 0 : i64, tpu.core_type = #tpu.core_type<tc>, window_params = [{pipeline_mode = #tpu.pipeline_mode<synchronous>, transform_indices = @transform_0, window_bounds = array<i64: 16, 16>}, {pipeline_mode = #tpu.pipeline_mode<synchronous>, transform_indices = @transform_1, window_bounds = array<i64: 2, 16>}, {pipeline_mode = #tpu.pipeline_mode<synchronous>, transform_indices = @transform_2, window_bounds = array<i64: 16, 8>}, {pipeline_mode = #tpu.pipeline_mode<synchronous>, transform_indices = @transform_3, window_bounds = array<i64: 8, 64>}, {pipeline_mode = #tpu.pipeline_mode<synchronous>, transform_indices = @transform_4, window_bounds = array<i64: 1, 64>}, {pipeline_mode = #tpu.pipeline_mode<synchronous>, transform_indices = @transform_5, window_bounds = array<i64: 2, 64, 64>}, {pipeline_mode = #tpu.pipeline_mode<synchronous>, transform_indices = @transform_6, window_bounds = array<i64: 2, 1, 64>}, {pipeline_mode = #tpu.pipeline_mode<synchronous>, transform_indices = @transform_7, window_bounds = array<i64: 64, 128>}, {pipeline_mode = #tpu.pipeline_mode<synchronous>, transform_indices = @transform_8, window_bounds = array<i64: 64, 128>}, {pipeline_mode = #tpu.pipeline_mode<synchronous>, transform_indices = @transform_9, window_bounds = array<i64: 1, 128>}, {pipeline_mode = #tpu.pipeline_mode<synchronous>, transform_indices = @transform_10, window_bounds = array<i64: 2, 128>}, {pipeline_mode = #tpu.pipeline_mode<synchronous>, transform_indices = @transform_11, window_bounds = array<i64: 2, 128>}]} {
    %c0 = arith.constant 0 : index
    %c0_0 = arith.constant 0 : index
    %0 = vector.load %arg1[%c0, %c0_0] : memref<16x16xf32, #tpu.memory_space<vmem>>, vector<16x16xf32>
    %c0_1 = arith.constant 0 : index
    %c0_2 = arith.constant 0 : index
    %1 = vector.load %arg3[%c0_1, %c0_2] : memref<16x8xf32, #tpu.memory_space<vmem>>, vector<16x8xf32>
    %cst = arith.constant dense<0.000000e+00> : vector<16x8xf32>
    %2 = tpu.matmul %0, %1, %cst {dimension_numbers = #tpu.dot_dimension_numbers<[1], [0], [0], [1], [0, 0, 1, 1], [], []>} : vector<16x16xf32>, vector<16x8xf32>, vector<16x8xf32> -> vector<16x8xf32>
    %c0_3 = arith.constant 0 : index
    %c0_4 = arith.constant 0 : index
    %3 = vector.load %arg4[%c0_3, %c0_4] : memref<8x64xf32, #tpu.memory_space<vmem>>, vector<8x64xf32>
    %cst_5 = arith.constant dense<0.000000e+00> : vector<16x64xf32>
    %4 = tpu.matmul %2, %3, %cst_5 {dimension_numbers = #tpu.dot_dimension_numbers<[1], [0], [0], [1], [0, 0, 1, 1], [], []>} : vector<16x8xf32>, vector<8x64xf32>, vector<16x64xf32> -> vector<16x64xf32>
    %c0_6 = arith.constant 0 : index
    %c0_7 = arith.constant 0 : index
    %5 = vector.load %arg5[%c0_6, %c0_7] : memref<1x64xf32, #tpu.memory_space<vmem>>, vector<1x64xf32>
    %6 = vector.broadcast %5 : vector<1x64xf32> to vector<16x64xf32>
    %7 = arith.addf %4, %6 : vector<16x64xf32>
    %c0_8 = arith.constant 0 : index
    %c0_9 = arith.constant 0 : index
    %c0_10 = arith.constant 0 : index
    %8 = vector.load %arg6[%c0_8, %c0_9, %c0_10] : memref<2x64x64xf32, #tpu.memory_space<vmem>>, vector<1x64x64xf32>
    %9 = vector.shape_cast %8 : vector<1x64x64xf32> to vector<64x64xf32>
    %cst_11 = arith.constant dense<0.000000e+00> : vector<16x64xf32>
    %10 = tpu.matmul %7, %9, %cst_11 {dimension_numbers = #tpu.dot_dimension_numbers<[1], [0], [0], [1], [0, 0, 1, 1], [], []>} : vector<16x64xf32>, vector<64x64xf32>, vector<16x64xf32> -> vector<16x64xf32>
    %cst_12 = arith.constant dense<0.000000e+00> : vector<16x64xf32>
    %11 = tpu.matmul %0, %10, %cst_12 {dimension_numbers = #tpu.dot_dimension_numbers<[1], [0], [0], [1], [0, 0, 1, 1], [], []>} : vector<16x16xf32>, vector<16x64xf32>, vector<16x64xf32> -> vector<16x64xf32>
    %c0_13 = arith.constant 0 : index
    %c0_14 = arith.constant 0 : index
    %c0_15 = arith.constant 0 : index
    %12 = vector.load %arg7[%c0_13, %c0_14, %c0_15] : memref<2x1x64xf32, #tpu.memory_space<vmem>>, vector<1x1x64xf32>
    %13 = vector.shape_cast %12 : vector<1x1x64xf32> to vector<1x64xf32>
    %14 = vector.broadcast %13 : vector<1x64xf32> to vector<16x64xf32>
    %15 = arith.addf %11, %14 : vector<16x64xf32>
    %cst_16 = arith.constant 0.000000e+00 : f32
    %16 = vector.broadcast %cst_16 : f32 to vector<16x64xf32>
    %17 = arith.maximumf %15, %16 : vector<16x64xf32>
    %c1 = arith.constant 1 : index
    %c0_17 = arith.constant 0 : index
    %c0_18 = arith.constant 0 : index
    %18 = vector.load %arg6[%c1, %c0_17, %c0_18] : memref<2x64x64xf32, #tpu.memory_space<vmem>>, vector<1x64x64xf32>
    %19 = vector.shape_cast %18 : vector<1x64x64xf32> to vector<64x64xf32>
    %cst_19 = arith.constant dense<0.000000e+00> : vector<16x64xf32>
    %20 = tpu.matmul %17, %19, %cst_19 {dimension_numbers = #tpu.dot_dimension_numbers<[1], [0], [0], [1], [0, 0, 1, 1], [], []>} : vector<16x64xf32>, vector<64x64xf32>, vector<16x64xf32> -> vector<16x64xf32>
    %cst_20 = arith.constant dense<0.000000e+00> : vector<16x64xf32>
    %21 = tpu.matmul %0, %20, %cst_20 {dimension_numbers = #tpu.dot_dimension_numbers<[1], [0], [0], [1], [0, 0, 1, 1], [], []>} : vector<16x16xf32>, vector<16x64xf32>, vector<16x64xf32> -> vector<16x64xf32>
    %c1_21 = arith.constant 1 : index
    %c0_22 = arith.constant 0 : index
    %c0_23 = arith.constant 0 : index
    %22 = vector.load %arg7[%c1_21, %c0_22, %c0_23] : memref<2x1x64xf32, #tpu.memory_space<vmem>>, vector<1x1x64xf32>
    %23 = vector.shape_cast %22 : vector<1x1x64xf32> to vector<1x64xf32>
    %24 = vector.broadcast %23 : vector<1x64xf32> to vector<16x64xf32>
    %25 = arith.addf %21, %24 : vector<16x64xf32>
    %cst_24 = arith.constant 0.000000e+00 : f32
    %26 = vector.broadcast %cst_24 : f32 to vector<16x64xf32>
    %27 = arith.maximumf %25, %26 : vector<16x64xf32>
    %c0_25 = arith.constant 0 : index
    %c0_26 = arith.constant 0 : index
    %28 = vector.load %arg2[%c0_25, %c0_26] : memref<2x16xf32, #tpu.memory_space<vmem>>, vector<2x16xf32>
    %cst_27 = arith.constant dense<0.000000e+00> : vector<2x64xf32>
    %29 = tpu.matmul %28, %27, %cst_27 {dimension_numbers = #tpu.dot_dimension_numbers<[1], [0], [0], [1], [0, 0, 1, 1], [], []>} : vector<2x16xf32>, vector<16x64xf32>, vector<2x64xf32> -> vector<2x64xf32>
    %c0_28 = arith.constant 0 : index
    %c0_29 = arith.constant 0 : index
    %30 = vector.load %arg8[%c0_28, %c0_29] : memref<64x128xf32, #tpu.memory_space<vmem>>, vector<64x128xf32>
    %cst_30 = arith.constant dense<0.000000e+00> : vector<2x128xf32>
    %31 = tpu.matmul %29, %30, %cst_30 {dimension_numbers = #tpu.dot_dimension_numbers<[1], [0], [0], [1], [0, 0, 1, 1], [], []>} : vector<2x64xf32>, vector<64x128xf32>, vector<2x128xf32> -> vector<2x128xf32>
    %c0_31 = arith.constant 0 : index
    %c0_32 = arith.constant 0 : index
    %32 = vector.load %arg12[%c0_31, %c0_32] : memref<2x128xf32, #tpu.memory_space<vmem>>, vector<2x128xf32>
    tpu.vector_store %arg12[%c0_31, %c0_32], %31 {strides = array<i32>} : memref<2x128xf32, #tpu.memory_space<vmem>>, vector<2x128xf32>,
    %c0_33 = arith.constant 0 : index
    %c0_34 = arith.constant 0 : index
    %33 = vector.load %arg9[%c0_33, %c0_34] : memref<64x128xf32, #tpu.memory_space<vmem>>, vector<64x128xf32>
    %cst_35 = arith.constant dense<0.000000e+00> : vector<2x128xf32>
    %34 = tpu.matmul %29, %33, %cst_35 {dimension_numbers = #tpu.dot_dimension_numbers<[1], [0], [0], [1], [0, 0, 1, 1], [], []>} : vector<2x64xf32>, vector<64x128xf32>, vector<2x128xf32> -> vector<2x128xf32>
    %c0_36 = arith.constant 0 : index
    %c0_37 = arith.constant 0 : index
    %35 = vector.load %arg10[%c0_36, %c0_37] : memref<1x128xf32, #tpu.memory_space<vmem>>, vector<1x128xf32>
    %36 = vector.broadcast %35 : vector<1x128xf32> to vector<2x128xf32>
    %37 = arith.addf %34, %36 : vector<2x128xf32>
    %c0_38 = arith.constant 0 : index
    %c0_39 = arith.constant 0 : index
    %38 = vector.load %arg11[%c0_38, %c0_39] : memref<2x128xf32, #tpu.memory_space<vmem>>, vector<2x128xf32>
    tpu.vector_store %arg11[%c0_38, %c0_39], %37 {strides = array<i32>} : memref<2x128xf32, #tpu.memory_space<vmem>>, vector<2x128xf32>,
    return
  }
  func.func @transform_0(%arg0: i32) -> (i32, i32) {
    %c0_i32 = arith.constant 0 : i32
    %c0_i32_0 = arith.constant 0 : i32
    %c0_i32_1 = arith.constant 0 : i32
    return %c0_i32, %c0_i32_0 : i32, i32
  }
  func.func @transform_1(%arg0: i32) -> (i32, i32) {
    %c0_i32 = arith.constant 0 : i32
    %c0_i32_0 = arith.constant 0 : i32
    %c0_i32_1 = arith.constant 0 : i32
    return %c0_i32, %c0_i32_0 : i32, i32
  }
  func.func @transform_2(%arg0: i32) -> (i32, i32) {
    %c0_i32 = arith.constant 0 : i32
    %c0_i32_0 = arith.constant 0 : i32
    %c0_i32_1 = arith.constant 0 : i32
    return %c0_i32, %c0_i32_0 : i32, i32
  }
  func.func @transform_3(%arg0: i32) -> (i32, i32) {
    %c0_i32 = arith.constant 0 : i32
    %c0_i32_0 = arith.constant 0 : i32
    %c0_i32_1 = arith.constant 0 : i32
    return %c0_i32, %c0_i32_0 : i32, i32
  }
  func.func @transform_4(%arg0: i32) -> (i32, i32) {
    %c0_i32 = arith.constant 0 : i32
    %c0_i32_0 = arith.constant 0 : i32
    %c0_i32_1 = arith.constant 0 : i32
    return %c0_i32, %c0_i32_0 : i32, i32
  }
  func.func @transform_5(%arg0: i32) -> (i32, i32, i32) {
    %c0_i32 = arith.constant 0 : i32
    %c0_i32_0 = arith.constant 0 : i32
    %c0_i32_1 = arith.constant 0 : i32
    %c0_i32_2 = arith.constant 0 : i32
    return %c0_i32, %c0_i32_0, %c0_i32_1 : i32, i32, i32
  }
  func.func @transform_6(%arg0: i32) -> (i32, i32, i32) {
    %c0_i32 = arith.constant 0 : i32
    %c0_i32_0 = arith.constant 0 : i32
    %c0_i32_1 = arith.constant 0 : i32
    %c0_i32_2 = arith.constant 0 : i32
    return %c0_i32, %c0_i32_0, %c0_i32_1 : i32, i32, i32
  }
  func.func @transform_7(%arg0: i32) -> (i32, i32) {
    %c0_i32 = arith.constant 0 : i32
    %c0_i32_0 = arith.constant 0 : i32
    %c0_i32_1 = arith.constant 0 : i32
    return %c0_i32, %c0_i32_0 : i32, i32
  }
  func.func @transform_8(%arg0: i32) -> (i32, i32) {
    %c0_i32 = arith.constant 0 : i32
    %c0_i32_0 = arith.constant 0 : i32
    %c0_i32_1 = arith.constant 0 : i32
    return %c0_i32, %c0_i32_0 : i32, i32
  }
  func.func @transform_9(%arg0: i32) -> (i32, i32) {
    %c0_i32 = arith.constant 0 : i32
    %c0_i32_0 = arith.constant 0 : i32
    %c0_i32_1 = arith.constant 0 : i32
    return %c0_i32, %c0_i32_0 : i32, i32
  }
  func.func @transform_10(%arg0: i32) -> (i32, i32) {
    %c0_i32 = arith.constant 0 : i32
    %c0_i32_0 = arith.constant 0 : i32
    %c0_i32_1 = arith.constant 0 : i32
    return %c0_i32, %c0_i32_0 : i32, i32
  }
  func.func @transform_11(%arg0: i32) -> (i32, i32) {
    %c0_i32 = arith.constant 0 : i32
    %c0_i32_0 = arith.constant 0 : i32
    %c0_i32_1 = arith.constant 0 : i32
    return %c0_i32, %c0_i32_0 : i32, i32
  }
}

</mosaic_0001>

<bundles_post_ra>
// kernel: tpu_custom_call.1
= control target key start
LH: loop header
LB: loop body
LE: loop exit
PB: predicated region body
PF: predicated region fallthrough
CT: control target
= control target key end

     0   :  { %17 = vsyncpa [#allocation3], 0  ;;  %s1360_s0 = inlined_call_operand.vmem [shape: f32[16,16], index: 0, kind: input, shape index: {}]   ;;  %s1361_s1 = inlined_call_operand.hbm [shape: f32[2,16], index: 1, kind: input, shape index: {}]   ;;  %s1362_s2 = inlined_call_operand.vmem [shape: f32[16,8], index: 2, kind: input, shape index: {}]   ;;  %s1363_s3 = inlined_call_operand.vmem [shape: f32[8,64], index: 3, kind: input, shape index: {}]   ;;  %s1364_s4 = inlined_call_operand.vmem [shape: f32[1,64], index: 4, kind: input, shape index: {}]   ;;  %s1365_s5 = inlined_call_operand.hbm [shape: f32[2,64,64], index: 5, kind: input, shape index: {}]   ;;  %s1366_s6 = inlined_call_operand.vmem [shape: f32[2,1,64], index: 6, kind: input, shape index: {}]   ;;  %s1367_s7 = inlined_call_operand.hbm [shape: f32[64,128], index: 7, kind: input, shape index: {}]   ;;  %s1368_s8 = inlined_call_operand.hbm [shape: f32[64,128], index: 8, kind: input, shape index: {}]   ;;  %s1369_s9 = inlined_call_operand.vmem [shape: f32[1,128], index: 9, kind: input, shape index: {}]   ;;  %s1370_s10 = inlined_call_operand.hbm [shape: f32[2,128], index: 10, kind: output, shape index: {0}]   ;;  %s1371_s11 = inlined_call_operand.hbm [shape: f32[2,128], index: 11, kind: output, shape index: {1}]  }
   0x1   :  { %18 = vsyncpa [#allocation6], 0 }
   0x2   :  { %19 = vsyncpa [#allocation9], 0 }
   0x3   :  { %20 = vsyncpa [#allocation4], 0 }
   0x4   :  { %21 = vsyncpa [#allocation12], 0  ;;  %s1215_s17 = smov [#allocation5]  }
   0x5   :  { %s45_s18 = sshll.u32 %s1215_s17, 4  ;;  %s46_s18 = int_to_ptr.vmem [resolvable:$true] %s45_s18 }
   0x6   :  { %s1093_s19 = scalar_lea.vmem %s46_s18, 2048  ;;  %p1098_p1 = scmp.lt.s32.totalorder %s46_s18, %s46_s18 }
   0x7   :  { %p1094_p0 = scmp.ne.s32.totalorder %s46_s18, %s1093_s19  ;;  %p1099_p2 = scmp.lt.s32.totalorder %s1093_s19, %s1093_s19 }
   0x9   :  { %p1100_p3 = por %p1099_p2, %p1098_p1 }
   0xb   :  { %p1101_p4 = pnand %p1100_p3, %p1094_p0 }
   0xd   :  { %1104 = shalt.err (!%p1101_p4)
}
   0xe   :  { %s1216_s20 = smov 128   ;;  %s1217_s21 = smov 8  }
   0xf   :  { %51 = dma.hbm_to_vmem [thread:$0]  %s1365_s5, 2048, %s46_s18, [#allocation6], %s1216_s20, %s1216_s20, %s1217_s21  }
  0x10   :  { %s1218_s24 = smov [#allocation2]   ;;  %s1219_s26 = smov [#allocation7]  }
  0x11   :  { %s30_s25 = sshll.u32 %s1218_s24, 4  ;;  %s59_s27 = sshll.u32 %s1219_s26, 4  ;;  %s31_s25 = int_to_ptr.vmem [resolvable:$true] %s30_s25  ;;  %s60_s27 = int_to_ptr.vmem [resolvable:$true] %s59_s27 }
  0x12   :  { %s1113_s28 = scalar_lea.vmem %s31_s25, 32  ;;  %p1118_p6 = scmp.lt.s32.totalorder %s31_s25, %s31_s25 }
  0x13   :  { %p1114_p5 = scmp.ne.s32.totalorder %s31_s25, %s1113_s28  ;;  %p1119_p7 = scmp.lt.s32.totalorder %s1113_s28, %s1113_s28 }
  0x15   :  { %p1120_p8 = por %p1119_p7, %p1118_p6 }
  0x17   :  { %p1121_p9 = pnand %p1120_p8, %p1114_p5 }
  0x19   :  { %1124 = shalt.err (!%p1121_p9)
}
  0x1a   :  { %33 = dma.hbm_to_vmem [thread:$0]  %s1361_s1, 32, %s31_s25, [#allocation3]  }
  0x1b   :  { %s1133_s12 = scalar_lea.vmem %s60_s27, 1024  ;;  %p1138_p11 = scmp.lt.s32.totalorder %s60_s27, %s60_s27 }
  0x1c   :  { %p1134_p10 = scmp.ne.s32.totalorder %s60_s27, %s1133_s12  ;;  %p1139_p12 = scmp.lt.s32.totalorder %s1133_s12, %s1133_s12 }
  0x1e   :  { %p1140_p13 = por %p1139_p12, %p1138_p11 }
  0x20   :  { %p1141_p0 = pnand %p1140_p13, %p1134_p10 }
  0x22   :  { %1144 = shalt.err (!%p1141_p0)
}
  0x23   :  { %65 = dma.hbm_to_vmem [thread:$0]  %s1367_s7, 1024, %s60_s27, [#allocation6], %s1216_s20, %s1216_s20, %s1217_s21  }
  0x24   :  { %s1220_s14 = smov [#allocation8]  }
  0x25   :  { %s71_s15 = sshll.u32 %s1220_s14, 4  ;;  %s72_s15 = int_to_ptr.vmem [resolvable:$true] %s71_s15 }
  0x26   :  { %s1153_s16 = scalar_lea.vmem %s72_s15, 1024  ;;  %p1158_p2 = scmp.lt.s32.totalorder %s72_s15, %s72_s15 }
  0x27   :  { %p1154_p1 = scmp.ne.s32.totalorder %s72_s15, %s1153_s16  ;;  %p1159_p3 = scmp.lt.s32.totalorder %s1153_s16, %s1153_s16 }
  0x29   :  { %p1160_p4 = por %p1159_p3, %p1158_p2 }
  0x2b   :  { %p1161_p5 = pnand %p1160_p4, %p1154_p1 }
  0x2d   :  { %1164 = shalt.err (!%p1161_p5)
}
  0x2e   :  { %77 = dma.hbm_to_vmem [thread:$0]  %s1368_s8, 1024, %s72_s15, [#allocation9], %s1216_s20, %s1216_s20, %s1217_s21  }
  0x2f   :  { %1205 = dma.done.wait [#allocation3], 32  }
  0x30   :  { %1206 = vsyncadd [#allocation3], 4294967264 }
  0x31   :  { %1207 = dma.done.wait [#allocation6], 3072  }
  0x32   :  { %1208 = vsyncadd [#allocation6], 4294964224 }
  0x33   :  { %1209 = dma.done.wait [#allocation9], 1024  }
  0x34   :  { %1210 = vsyncadd [#allocation9], 4294966272  ;;  %vm96_vm0 = vcmask 130048   ;;  %v95_v0 = vld [vmem:[%s1362_s2 + $0x8] sm:$0xff]  ;;  %v94_v1 = vld [vmem:[%s1362_s2] sm:$0xff]  ;;  %vm186_vm1 = vcmask 64512  }
  0x35   :  { %v92_v2 = vld [vmem:[%s1360_s0] sm:$0xff]  ;;  %966 = vmatprep.subr.mxu0 %v95_v0  ;;  %v1319_v3 = vld [vmem:[%s1360_s0 + $0x8] sm:$0xff]  ;;  %v274_v8 = vld [vmem:[#allocation5 + $0x30] sm:$0xff]  ;;  %vm276_vm2 = vcmask 523264   ;;  %v1221_v39 = vmov 0.0   ;;  %vm1222_vm3 = vmmov 0  }
  0x36   :  { %970 = vmatprep.mubr.msk.f32.mxu0 %vm96_vm0, %v92_v2  ;;  %967 = vmatpush3.msra.mxu0 %v95_v0  ;;  %v178_v4 = vld [vmem:[%s1363_s3] sm:$0xff]  ;;  %v273_v9 = vld [vmem:[#allocation5 + $0x28] sm:$0xff]  ;;  %v270_v12 = vld [vmem:[#allocation5 + $0x10] sm:$0xff]  ;;  %s1224_s12 = smov [#allocation10]  }
  0x37   :  { %968 = vmatprep.subr.mxu0 %v94_v1  ;;  %973 = vmatprep.subr.mxu1 %v178_v4  ;;  %v275_v5 = vld [vmem:[#allocation5 + $0x38] sm:$0xff]  ;;  %v272_v10 = vld [vmem:[#allocation5 + $0x20] sm:$0xff]  ;;  %v269_v13 = vld [vmem:[#allocation5 + $0x8] sm:$0xff]  ;;  %s865_s5 = sshll.u32 %s1224_s12, 4  ;;  %s866_s5 = int_to_ptr.vmem [resolvable:$true] %s865_s5 }
  0x38   :  { %969 = vmatpush3.msra.mxu0 %v94_v1  ;;  %974 = vmatpush3.msra.mxu1 %v178_v4  ;;  %v271_v11 = vld [vmem:[#allocation5 + $0x18] sm:$0xff]  ;;  %v268_v14 = vld [vmem:[#allocation5] sm:$0xff]  ;;  %v449_v23 = vld [vmem:[#allocation5 + $0x70] sm:$0xff] }
  0x39   :  { %971 = vmatmul.mubr.msk.f32.vlgmr.msra.gmra.mxu0 %vm96_vm0, %v1319_v3  ;;  %978 = vmatprep.subr.mxu1 %v275_v5  ;;  %v892_v16 = vld [vmem:[%s1364_s4] ss:$0 sm:$0xff]  ;;  %v448_v24 = vld [vmem:[#allocation5 + $0x68] sm:$0xff]  ;;  %v447_v25 = vld [vmem:[#allocation5 + $0x60] sm:$0xff] }
  0x3a   :  { %1001 = vmatprep.mubr.msk.f32.mxu0 %vm96_vm0, %v92_v2  ;;  %v450_v22 = vld [vmem:[#allocation5 + $0x78] sm:$0xff]  ;;  %v445_v27 = vld [vmem:[#allocation5 + $0x50] sm:$0xff]  ;;  %v444_v28 = vld [vmem:[#allocation5 + $0x48] sm:$0xff] }
  0x3b   :  { %v446_v26 = vld [vmem:[#allocation5 + $0x58] sm:$0xff]  ;;  %v443_v29 = vld [vmem:[#allocation5 + $0x40] sm:$0xff]  ;;  %v697_v41 = vld [vmem:[#allocation7 + $0x30] sm:$0xff] }
  0x3c   :  { %v897_v30 = vld [vmem:[%s1366_s6] ss:$0 sm:$0xff]  ;;  %v696_v42 = vld [vmem:[#allocation7 + $0x28] sm:$0xff]  ;;  %v695_v43 = vld [vmem:[#allocation7 + $0x20] sm:$0xff] }
  0x3d   :  { %v698_v40 = vld [vmem:[#allocation7 + $0x38] sm:$0xff]  ;;  %v693_v45 = vld [vmem:[#allocation7 + $0x10] sm:$0xff]  ;;  %v692_v46 = vld [vmem:[#allocation7 + $0x8] sm:$0xff] }
  0x3e   :  { %v694_v44 = vld [vmem:[#allocation7 + $0x18] sm:$0xff]  ;;  %v779_v56 = vld [vmem:[#allocation8 + $0x30] sm:$0xff]  ;;  %v778_v57 = vld [vmem:[#allocation8 + $0x28] sm:$0xff] }
  0x3f   :  { %v903_v47 = vld [vmem:[%s1366_s6 + $0x1] ss:$0 sm:$0xff]  ;;  %v777_v58 = vld [vmem:[#allocation8 + $0x20] sm:$0xff]  ;;  %v775_v60 = vld [vmem:[#allocation8 + $0x10] sm:$0xff]  ;;  %s1223_s6 = smov [#allocation11]  }
  0x40   :  { %v617_v54 = vld [vmem:[#allocation2] sm:$0x3]  ;;  %v774_v61 = vld [vmem:[#allocation8 + $0x8] sm:$0xff]  ;;  %v691_v62 = vld [vmem:[#allocation7] sm:$0xff]  ;;  %s875_s28 = sshll.u32 %s1223_s6, 4  ;;  %s876_s28 = int_to_ptr.vmem [resolvable:$true] %s875_s28 }
  0x41   :  { %v780_v55 = vld [vmem:[#allocation8 + $0x38] sm:$0xff]  ;;  %v773_v63 = vld [vmem:[#allocation8] sm:$0xff]  ;;  %s1165_s13 = scalar_lea.vmem %s876_s28, 32  ;;  %p1170_p7 = scmp.lt.s32.totalorder %s876_s28, %s876_s28 }
  0x42   :  { %v776_v59 = vld [vmem:[#allocation8 + $0x18] sm:$0xff]  ;;  %p1166_p6 = scmp.ne.s32.totalorder %s876_s28, %s1165_s13  ;;  %p1171_p8 = scmp.lt.s32.totalorder %s1165_s13, %s1165_s13 }
  0x44   :  { %p1172_p9 = por %p1171_p8, %p1170_p7 }
  0x46   :  { %p1173_p10 = pnand %p1172_p9, %p1166_p6 }
  0xf9   :  { %v972_v6 = vpop.f32.mrf.mxu0 }
  0xfb   :  { %v169_v7 = vpop.f32.mrf.mxu0 }
  0xfc   :  { %975 = vmatprep.mubr.msk.f32.mxu1 %vm186_vm1, %v169_v7 }
  0xfd   :  { %976 = vmatmul.mubr.msk.f32.vlgmr.msra.gmra.mxu1 %vm186_vm1, %v972_v6 }
  0xfe   :  { %979 = vmatpush3.msra.mxu1 %v275_v5 }
  0xff   :  { %980 = vmatprep.subr.mxu1 %v274_v8 }
 0x100   :  { %981 = vmatpush3.msra.mxu1 %v274_v8 }
 0x101   :  { %982 = vmatprep.subr.mxu1 %v273_v9 }
 0x102   :  { %983 = vmatpush3.msra.mxu1 %v273_v9 }
 0x103   :  { %984 = vmatprep.subr.mxu1 %v272_v10 }
 0x104   :  { %985 = vmatpush3.msra.mxu1 %v272_v10 }
 0x105   :  { %986 = vmatprep.subr.mxu1 %v271_v11 }
 0x106   :  { %987 = vmatpush3.msra.mxu1 %v271_v11 }
 0x107   :  { %988 = vmatprep.subr.mxu1 %v270_v12 }
 0x108   :  { %989 = vmatpush3.msra.mxu1 %v270_v12 }
 0x109   :  { %990 = vmatprep.subr.mxu1 %v269_v13 }
 0x10a   :  { %991 = vmatpush3.msra.mxu1 %v269_v13 }
 0x10b   :  { %992 = vmatprep.subr.mxu1 %v268_v14 }
 0x10c   :  { %993 = vmatpush3.msra.mxu1 %v268_v14 }
 0x1bd   :  { %v977_v15 = vpop.f32.mrf.mxu1 }
 0x1be   :  { %v265_v19 = vadd.f32 %v977_v15, %v892_v16 }
 0x1bf   :  { %v259_v17 = vpop.f32.mrf.mxu1 }
 0x1c0   :  { %v260_v18 = vadd.f32 %v892_v16, %v259_v17 }
 0x1c2   :  { %994 = vmatprep.mubr.msk.f32.mxu1 %vm276_vm2, %v260_v18 }
 0x1c3   :  { %995 = vmatmul.mubr.msk.f32.vlgmr.msra.gmra.mxu1 %vm276_vm2, %v265_v19 }
 0x1c4   :  { %1027 = vmatprep.mubr.msk.f32.mxu1 %vm96_vm0, %v92_v2  ;;  %v908_v2 = vld [vmem:[%s1369_s9] ss:$0 sm:$0xff] }
 0x283   :  { %v996_v20 = vpop.f32.mrf.mxu1 }
 0x284   :  { %997 = vmatprep.subr.mxu0 %v996_v20 }
 0x285   :  { %v349_v21 = vpop.f32.mrf.mxu1  ;;  %998 = vmatpush3.msra.mxu0 %v996_v20 }
 0x286   :  { %999 = vmatprep.subr.mxu0 %v349_v21 }
 0x287   :  { %1000 = vmatpush3.msra.mxu0 %v349_v21 }
 0x288   :  { %1002 = vmatmul.mubr.msk.f32.vlgmr.msra.gmra.mxu0 %vm96_vm0, %v1319_v3  ;;  %1004 = vmatprep.subr.mxu0 %v450_v22 }
 0x289   :  { %1005 = vmatpush3.msra.mxu0 %v450_v22 }
 0x28a   :  { %1006 = vmatprep.subr.mxu0 %v449_v23 }
 0x28b   :  { %1007 = vmatpush3.msra.mxu0 %v449_v23 }
 0x28c   :  { %1008 = vmatprep.subr.mxu0 %v448_v24 }
 0x28d   :  { %1009 = vmatpush3.msra.mxu0 %v448_v24 }
 0x28e   :  { %1010 = vmatprep.subr.mxu0 %v447_v25 }
 0x28f   :  { %1011 = vmatpush3.msra.mxu0 %v447_v25 }
 0x290   :  { %1012 = vmatprep.subr.mxu0 %v446_v26 }
 0x291   :  { %1013 = vmatpush3.msra.mxu0 %v446_v26 }
 0x292   :  { %1014 = vmatprep.subr.mxu0 %v445_v27 }
 0x293   :  { %1015 = vmatpush3.msra.mxu0 %v445_v27 }
 0x294   :  { %1016 = vmatprep.subr.mxu0 %v444_v28 }
 0x295   :  { %1017 = vmatpush3.msra.mxu0 %v444_v28 }
 0x296   :  { %1018 = vmatprep.subr.mxu0 %v443_v29 }
 0x297   :  { %1019 = vmatpush3.msra.mxu0 %v443_v29 }
 0x298   :  { %1037 = vmatprep.subr.mxu0 %v1221_v39 }
 0x348   :  { %v1003_v31 = vpop.f32.mrf.mxu0 }
 0x349   :  { %v437_v32 = vadd.f32 %v1003_v31, %v897_v30 }
 0x34a   :  { %v431_v33 = vpop.f32.mrf.mxu0 }
 0x34b   :  { %v432_v34 = vadd.f32 %v897_v30, %v431_v33  ;;  %v441_v36 = vmax.f32 %v437_v32, 0.0 }
 0x34d   :  { %v440_v35 = vmax.f32 %v432_v34, 0.0 }
 0x34f   :  { %1020 = vmatprep.mubr.msk.f32.mxu0 %vm276_vm2, %v440_v35 }
 0x350   :  { %1021 = vmatmul.mubr.msk.f32.vlgmr.msra.gmra.mxu0 %vm276_vm2, %v441_v36 }
 0x351   :  { %1053 = vmatprep.mubr.msk.f32.mxu0 %vm1222_vm3, %v1221_v39  ;;  %1038 = vmatpush3.msra.mxu0 %v698_v40 }
 0x352   :  { %1039 = vmatprep.subr.mxu0 %v1221_v39 }
 0x353   :  { %1040 = vmatpush3.msra.mxu0 %v697_v41 }
 0x354   :  { %1041 = vmatprep.subr.mxu0 %v1221_v39 }
 0x355   :  { %1042 = vmatpush3.msra.mxu0 %v696_v42 }
 0x356   :  { %1043 = vmatprep.subr.mxu0 %v1221_v39 }
 0x357   :  { %1044 = vmatpush3.msra.mxu0 %v695_v43 }
 0x358   :  { %1045 = vmatprep.subr.mxu0 %v1221_v39 }
 0x359   :  { %1046 = vmatpush3.msra.mxu0 %v694_v44 }
 0x35a   :  { %1047 = vmatprep.subr.mxu0 %v1221_v39 }
 0x35b   :  { %1048 = vmatpush3.msra.mxu0 %v693_v45 }
 0x35c   :  { %1049 = vmatprep.subr.mxu0 %v1221_v39 }
 0x35d   :  { %1050 = vmatpush3.msra.mxu0 %v692_v46 }
 0x35e   :  { %1051 = vmatprep.subr.mxu0 %v1221_v39 }
 0x35f   :  { %1052 = vmatpush3.msra.mxu0 %v691_v62 }
 0x410   :  { %v1022_v37 = vpop.f32.mrf.mxu0 }
 0x411   :  { %1023 = vmatprep.subr.mxu1 %v1022_v37 }
 0x412   :  { %v523_v38 = vpop.f32.mrf.mxu0  ;;  %1024 = vmatpush3.msra.mxu1 %v1022_v37 }
 0x413   :  { %1025 = vmatprep.subr.mxu1 %v523_v38 }
 0x414   :  { %1026 = vmatpush3.msra.mxu1 %v523_v38 }
 0x415   :  { %1028 = vmatmul.mubr.msk.f32.vlgmr.msra.gmra.mxu1 %vm96_vm0, %v1319_v3  ;;  %1030 = vmatprep.subr.mxu1 %v1221_v39 }
 0x416   :  { %1034 = vmatprep.mubr.msk.f32.mxu1 %vm1222_vm3, %v1221_v39 }
 0x4d5   :  { %v1029_v48 = vpop.f32.mrf.mxu1 }
 0x4d6   :  { %v612_v49 = vadd.f32 %v1029_v48, %v903_v47 }
 0x4d7   :  { %v606_v50 = vpop.f32.mrf.mxu1 }
 0x4d8   :  { %v616_v51 = vmax.f32 %v612_v49, 0.0  ;;  %v607_v52 = vadd.f32 %v903_v47, %v606_v50 }
 0x4da   :  { %v615_v53 = vmax.f32 %v607_v52, 0.0  ;;  %1031 = vmatpush3.msra.mxu1 %v616_v51 }
 0x4db   :  { %1032 = vmatprep.subr.mxu1 %v1221_v39 }
 0x4dc   :  { %1033 = vmatpush3.msra.mxu1 %v615_v53 }
 0x4dd   :  { %1035 = vmatmul.mubr.msk.f32.vlgmr.msra.gmra.mxu1 %vm96_vm0, %v617_v54  ;;  %1056 = vmatprep.subr.mxu1 %v1221_v39 }
 0x4de   :  { %1057 = vmatpush3.msra.mxu1 %v780_v55  ;;  %1072 = vmatprep.mubr.msk.f32.mxu1 %vm1222_vm3, %v1221_v39 }
 0x4df   :  { %1058 = vmatprep.subr.mxu1 %v1221_v39 }
 0x4e0   :  { %1059 = vmatpush3.msra.mxu1 %v779_v56 }
 0x4e1   :  { %1060 = vmatprep.subr.mxu1 %v1221_v39 }
 0x4e2   :  { %1061 = vmatpush3.msra.mxu1 %v778_v57 }
 0x4e3   :  { %1062 = vmatprep.subr.mxu1 %v1221_v39 }
 0x4e4   :  { %1063 = vmatpush3.msra.mxu1 %v777_v58 }
 0x4e5   :  { %1064 = vmatprep.subr.mxu1 %v1221_v39 }
 0x4e6   :  { %1065 = vmatpush3.msra.mxu1 %v776_v59 }
 0x4e7   :  { %1066 = vmatprep.subr.mxu1 %v1221_v39 }
 0x4e8   :  { %1067 = vmatpush3.msra.mxu1 %v775_v60 }
 0x4e9   :  { %1068 = vmatprep.subr.mxu1 %v1221_v39 }
 0x4ea   :  { %1069 = vmatpush3.msra.mxu1 %v774_v61 }
 0x4eb   :  { %1070 = vmatprep.subr.mxu1 %v1221_v39 }
 0x4ec   :  { %1071 = vmatpush3.msra.mxu1 %v773_v63 }
 0x59d   :  { %v687_v0 = vpop.f32.mrf.mxu1 }
 0x59e   :  { %1054 = vmatmul.mubr.msk.f32.vlgmr.msra.gmra.mxu0 %vm276_vm2, %v687_v0  ;;  %1073 = vmatmul.mubr.msk.f32.vlgmr.msra.gmra.mxu1 %vm276_vm2, %v687_v0 }
 0x59f   :  { %v1036_v1 = vpop.f32.mrf.mxu1 }
 0x65e   :  { %v768_v3 = vpop.f32.mrf.mxu0  ;;  %v854_v4 = vpop.f32.mrf.mxu1 }
 0x65f   :  { %772 = vst [vmem:[#allocation11] sm:$0x3] %v768_v3  ;;  %v855_v5 = vadd.f32 %v908_v2, %v854_v4 }
 0x660   :  { %v1055_v6 = vpop.f32.mrf.mxu0  ;;  %v1074_v7 = vpop.f32.mrf.mxu1 }
 0x661   :  { %1176 = shalt.err (!%p1173_p10)
}
 0x662   :  { %878 = dma.vmem_to_hbm [thread:$0]  %s876_s28, 32, %s1371_s11, [#allocation12]   ;;  %858 = vst [vmem:[#allocation10] sm:$0x3] %v855_v5 }
 0x663   :  { %s1185_s9 = scalar_lea.vmem %s866_s5, 32  ;;  %p1190_p12 = scmp.lt.s32.totalorder %s866_s5, %s866_s5 }
 0x664   :  { %p1186_p11 = scmp.ne.s32.totalorder %s866_s5, %s1185_s9  ;;  %p1191_p13 = scmp.lt.s32.totalorder %s1185_s9, %s1185_s9 }
 0x666   :  { %p1192_p0 = por %p1191_p13, %p1190_p12 }
 0x668   :  { %p1193_p1 = pnand %p1192_p0, %p1186_p11 }
 0x66a   :  { %1196 = shalt.err (!%p1193_p1)
}
 0x66b   :  { %868 = dma.vmem_to_hbm [thread:$0]  %s866_s5, 32, %s1370_s10, [#allocation4]  }
 0x66c   :  { %1211 = dma.done.wait [#allocation4], 32  }
 0x66d   :  { %1212 = vsyncadd [#allocation4], 4294967264 }
 0x66e   :  { %1213 = dma.done.wait [#allocation12], 32  }
 0x66f   :  { %1214 = vsyncadd [#allocation12], 4294967264 }
 0x670   :  { %885 = vsyncpa [#allocation3], 1 }
 0x671   :  { %886 = vsyncpa [#allocation6], 1 }
 0x672   :  { %887 = vsyncpa [#allocation9], 1 }
 0x673   :  { %888 = vsyncpa [#allocation4], 1 }
 0x674   :  { %889 = vsyncpa [#allocation12], 1 }

</bundles_post_ra>
